<compile_context>
chip_gen: v7x
topology: tpu7x:2x2x1
jax: 0.10.0
libtpu: 0.0.40
codegen_flags: <defaults>
</compile_context>

<pallas_src>
import functools
import math

import jax
import jax.numpy as jnp
from jax import lax
from jax.experimental import pallas as pl
from jax.experimental.pallas import tpu as pltpu


def _mha_wrapper_kernel(x_ref, w_ref, o_ref, *, num_heads, d_out, seq_len):
    # x_ref : (Bb*T, d_in)        bf16 token rows for this grid step
    # w_ref : (d_in, 3*H*d_out)   bf16 packed [Q | K | V] weights (single-buffered)
    # o_ref : (Bb*T, H*d_out)     output slab, caller dtype
    rows, _ = x_ref.shape
    nh = num_heads
    t = seq_len
    bb = rows // t
    hd = nh * d_out

    # (1) Fused QKV projection for all heads over all Bb*T rows: one wide bf16
    #     MXU matmul with f32 accumulation.
    xw = jnp.dot(x_ref[...], w_ref[...],
                 preferred_element_type=jnp.float32)          # (rows, 3*H*d_out) f32

    scale = jnp.float32(1.0 / math.sqrt(d_out))
    q_all = xw[:, 0:hd] * scale        # fold 1/sqrt(d) into Q: O(rows*hd) VPU work
    k_all = xw[:, hd:2 * hd]
    v_all = xw[:, 2 * hd:3 * hd]

    # (2) Gather per-(batch-row, head) tiles into one leading batch axis
    #     z = b*H + h using only static 2-D slices + a leading-axis stack
    #     (no lane transposes), then cast operands to bf16 for the MXU.
    def gather(a):
        tiles = [a[b * t:(b + 1) * t, h * d_out:(h + 1) * d_out]
                 for b in range(bb) for h in range(nh)]
        return jnp.stack(tiles, axis=0).astype(jnp.bfloat16)  # (Bb*H, T, d_out)

    q3, k3, v3 = gather(q_all), gather(k_all), gather(v_all)

    # (3) Batched causal attention over z (single MXU push per matmul,
    #     f32 scores / softmax).
    s = jnp.einsum('ztd,zsd->zts', q3, k3,
                   preferred_element_type=jnp.float32)        # (Bb*H, T, T)
    row = lax.broadcasted_iota(jnp.int32, (t, t), 0)
    col = lax.broadcasted_iota(jnp.int32, (t, t), 1)
    s = jnp.where((col > row)[None], jnp.float32(-1e30), s)   # finite "-inf": no NaN

    m = jnp.max(s, axis=-1, keepdims=True)
    e = jnp.exp(s - m)
    denom = jnp.sum(e, axis=-1, keepdims=True)
    p = (e * pl.reciprocal(denom, approx=True)).astype(jnp.bfloat16)

    ctx = jnp.einsum('zts,zsd->ztd', p, v3,
                     preferred_element_type=jnp.float32)      # (Bb*H, T, d_out)

    # (4) Re-assemble (Bb*T, H*d_out) (== torch.cat over heads, dim=-1) and do
    #     one lane-dense store of the whole slab.
    out_rows = [jnp.concatenate([ctx[b * nh + h] for h in range(nh)], axis=-1)
                for b in range(bb)]
    o_ref[...] = jnp.concatenate(out_rows, axis=0).astype(o_ref.dtype)


def pack_qkv_weights(wq, wk, wv):
    """One-time packing (hoisted out of the forward path).

    (H, d_in, d_out) x3 -> (d_in, 3*H*d_out) bf16, columns [Q_h0..Q_hH | K | V].
    """
    nh, d_in, d_out = wq.shape
    del d_out

    def flat(w):  # (H, d_in, d_out) -> (d_in, H*d_out), head-major columns
        return jnp.transpose(w, (1, 0, 2)).reshape(d_in, -1)

    return jnp.concatenate([flat(wq), flat(wk), flat(wv)], axis=-1).astype(jnp.bfloat16)


def _pick_batch_block(batch, seq_len, target_rows=256):
    """Largest Bb dividing `batch` with Bb*seq_len <= ~target and 8-aligned rows,
    so each grid step feeds the MXU a healthy number of token rows."""
    best = batch  # block == full array is always legal
    for bb in range(1, batch + 1):
        if batch % bb:
            continue
        rows = bb * seq_len
        if rows <= max(target_rows, seq_len) and (rows % 8 == 0 or bb == batch):
            best = bb
    return best


def multi_head_attention_wrapper(x, w_packed, num_heads, d_out, *, block_batch=None):
    """x: (B, T, d_in); w_packed: (d_in, 3*H*d_out) from pack_qkv_weights.

    Returns (B, T, H*d_out) in x.dtype (== torch.cat([head(x) for head in heads], -1)).
    """
    B, T, d_in = x.shape
    hd = num_heads * d_out
    assert w_packed.shape == (d_in, 3 * hd), w_packed.shape

    bb = block_batch if block_batch is not None else _pick_batch_block(B, T)
    assert B % bb == 0
    rows = bb * T

    kernel = functools.partial(_mha_wrapper_kernel, num_heads=num_heads,
                               d_out=d_out, seq_len=T)

    cost = pl.CostEstimate(
        flops=2 * B * T * d_in * 3 * hd + 4 * B * num_heads * T * T * d_out,
        transcendentals=B * num_heads * T * T,
        bytes_accessed=B * T * d_in * 2 + d_in * 3 * hd * 2 + B * T * hd * x.dtype.itemsize,
    )

    # Row-flatten in XLA (free) so the kernel works on a lane-dense 2-D row slab
    # and the grid tiles token rows; operands go in as bf16.
    x2 = x.reshape(B * T, d_in).astype(jnp.bfloat16)

    out2 = pl.pallas_call(
        kernel,
        out_shape=jax.ShapeDtypeStruct((B * T, hd), x.dtype),
        grid_spec=pltpu.PrefetchScalarGridSpec(
            num_scalar_prefetch=0,
            grid=(B // bb,),
            in_specs=[
                pl.BlockSpec((rows, d_in), lambda i: (i, 0)),
                # Same weight block every step -> single-buffer it (default
                # double-buffering would only waste VMEM on the resident block).
                pl.BlockSpec((d_in, 3 * hd), lambda i: (0, 0),
                             pipeline_mode=pl.Buffered(buffer_count=1)),
            ],
            out_specs=pl.BlockSpec((rows, hd), lambda i: (i, 0)),
        ),
        compiler_params=pltpu.CompilerParams(
            dimension_semantics=("parallel",),
        ),
        cost_estimate=cost,
    )(x2, w_packed)

    return out2.reshape(B, T, hd)


def _reference(x, wq, wk, wv):
    """Plain-JAX f32 reference mirroring the PyTorch forward (eval mode)."""
    B, T, d_in = x.shape
    H, _, d_out = wq.shape
    heads = []
    mask = jnp.triu(jnp.ones((T, T), dtype=bool), k=1)
    for h in range(H):
        q = x @ wq[h]
        k = x @ wk[h]
        v = x @ wv[h]
        s = q @ jnp.swapaxes(k, 1, 2)
        s = jnp.where(mask[None], -jnp.inf, s)
        w = jax.nn.softmax(s / math.sqrt(d_out), axis=-1)
        heads.append(w @ v)
    return jnp.concatenate(heads, axis=-1)


if __name__ == "__main__":
    # Module hyperparams (small, consistent with the wrapper's forward):
    B, T = 2, 8           # batch, num_tokens (== context_length)
    d_in, d_out = 32, 16  # per-head input / output dims
    num_heads = 2
    dropout = 0.0         # eval-mode / p=0 -> identity

    key = jax.random.PRNGKey(0)
    kx, kq, kk, kv = jax.random.split(key, 4)
    x = jax.random.normal(kx, (B, T, d_in), dtype=jnp.float32)
    # Deterministic synthetic weights (equivalent to nn.Linear(d_in, d_out, bias=False))
    wq = jax.random.normal(kq, (num_heads, d_in, d_out), dtype=jnp.float32) * 0.1
    wk = jax.random.normal(kk, (num_heads, d_in, d_out), dtype=jnp.float32) * 0.1
    wv = jax.random.normal(kv, (num_heads, d_in, d_out), dtype=jnp.float32) * 0.1

    # Weight packing done ONCE at init (hoisted out of the per-call path).
    w_packed = pack_qkv_weights(wq, wk, wv)

    out = multi_head_attention_wrapper(x, w_packed, num_heads, d_out)
    out = jax.block_until_ready(out)

    ref = _reference(x, wq, wk, wv)
    assert out.shape == (B, T, num_heads * d_out), out.shape
    # bf16 matmul operands (+ approx EUP reciprocal) vs the f32 reference:
    assert jnp.allclose(out, ref, atol=3e-2, rtol=3e-2), "mismatch vs reference"

    print("KERNEL_OK")
</pallas_src>

<mosaic_0001>
module attributes {stable_mosaic.version = 11 : i64} {
  func.func @_mha_wrapper_kernel(%arg0: i32, %arg1: memref<16x32xbf16, #tpu.memory_space<vmem>>, %arg2: memref<32x96xbf16, #tpu.memory_space<vmem>>, %arg3: memref<16x32xf32, #tpu.memory_space<vmem>>) attributes {dimension_semantics = [#tpu.dimension_semantics<parallel>], iteration_bounds = array<i64: 1>, scalar_prefetch = 0 : i64, scratch_operands = 0 : i64, tpu.core_type = #tpu.core_type<tc>, window_params = [{transform_indices = @transform_0, window_bounds = array<i64: 16, 32>}, {pipeline_mode = #tpu.pipeline_mode<synchronous>, transform_indices = @transform_1, window_bounds = array<i64: 32, 96>}, {transform_indices = @transform_2, window_bounds = array<i64: 16, 32>}]} {
    %c0 = arith.constant 0 : index
    %c0_0 = arith.constant 0 : index
    %0 = vector.load %arg1[%c0, %c0_0] : memref<16x32xbf16, #tpu.memory_space<vmem>>, vector<16x32xbf16>
    %c0_1 = arith.constant 0 : index
    %c0_2 = arith.constant 0 : index
    %1 = vector.load %arg2[%c0_1, %c0_2] : memref<32x96xbf16, #tpu.memory_space<vmem>>, vector<32x96xbf16>
    %cst = arith.constant dense<0.000000e+00> : vector<16x96xf32>
    %2 = tpu.matmul %0, %1, %cst {dimension_numbers = #tpu.dot_dimension_numbers<[1], [0], [0], [1], [0, 0, 1, 1], [], []>} : vector<16x32xbf16>, vector<32x96xbf16>, vector<16x96xf32> -> vector<16x96xf32>
    %3 = vector.extract_strided_slice %2 {offsets = [0, 0], sizes = [16, 32], strides = [1, 1]} : vector<16x96xf32> to vector<16x32xf32>
    %cst_3 = arith.constant 2.500000e-01 : f32
    %4 = vector.broadcast %cst_3 : f32 to vector<16x32xf32>
    %5 = arith.mulf %3, %4 : vector<16x32xf32>
    %6 = vector.extract_strided_slice %2 {offsets = [0, 32], sizes = [16, 32], strides = [1, 1]} : vector<16x96xf32> to vector<16x32xf32>
    %7 = vector.extract_strided_slice %2 {offsets = [0, 64], sizes = [16, 32], strides = [1, 1]} : vector<16x96xf32> to vector<16x32xf32>
    %8 = vector.extract_strided_slice %5 {offsets = [0, 0], sizes = [8, 16], strides = [1, 1]} : vector<16x32xf32> to vector<8x16xf32>
    %9 = vector.extract_strided_slice %5 {offsets = [0, 16], sizes = [8, 16], strides = [1, 1]} : vector<16x32xf32> to vector<8x16xf32>
    %10 = vector.extract_strided_slice %5 {offsets = [8, 0], sizes = [8, 16], strides = [1, 1]} : vector<16x32xf32> to vector<8x16xf32>
    %11 = vector.extract_strided_slice %5 {offsets = [8, 16], sizes = [8, 16], strides = [1, 1]} : vector<16x32xf32> to vector<8x16xf32>
    %12 = vector.shape_cast %8 : vector<8x16xf32> to vector<1x8x16xf32>
    %13 = vector.shape_cast %9 : vector<8x16xf32> to vector<1x8x16xf32>
    %14 = vector.shape_cast %10 : vector<8x16xf32> to vector<1x8x16xf32>
    %15 = vector.shape_cast %11 : vector<8x16xf32> to vector<1x8x16xf32>
    %16 = tpu.concatenate %12, %13, %14, %15 in 0 : vector<1x8x16xf32>, vector<1x8x16xf32>, vector<1x8x16xf32>, vector<1x8x16xf32> -> vector<4x8x16xf32>
    %17 = arith.truncf %16 : vector<4x8x16xf32> to vector<4x8x16xbf16>
    %18 = vector.extract_strided_slice %6 {offsets = [0, 0], sizes = [8, 16], strides = [1, 1]} : vector<16x32xf32> to vector<8x16xf32>
    %19 = vector.extract_strided_slice %6 {offsets = [0, 16], sizes = [8, 16], strides = [1, 1]} : vector<16x32xf32> to vector<8x16xf32>
    %20 = vector.extract_strided_slice %6 {offsets = [8, 0], sizes = [8, 16], strides = [1, 1]} : vector<16x32xf32> to vector<8x16xf32>
    %21 = vector.extract_strided_slice %6 {offsets = [8, 16], sizes = [8, 16], strides = [1, 1]} : vector<16x32xf32> to vector<8x16xf32>
    %22 = vector.shape_cast %18 : vector<8x16xf32> to vector<1x8x16xf32>
    %23 = vector.shape_cast %19 : vector<8x16xf32> to vector<1x8x16xf32>
    %24 = vector.shape_cast %20 : vector<8x16xf32> to vector<1x8x16xf32>
    %25 = vector.shape_cast %21 : vector<8x16xf32> to vector<1x8x16xf32>
    %26 = tpu.concatenate %22, %23, %24, %25 in 0 : vector<1x8x16xf32>, vector<1x8x16xf32>, vector<1x8x16xf32>, vector<1x8x16xf32> -> vector<4x8x16xf32>
    %27 = arith.truncf %26 : vector<4x8x16xf32> to vector<4x8x16xbf16>
    %28 = vector.extract_strided_slice %7 {offsets = [0, 0], sizes = [8, 16], strides = [1, 1]} : vector<16x32xf32> to vector<8x16xf32>
    %29 = vector.extract_strided_slice %7 {offsets = [0, 16], sizes = [8, 16], strides = [1, 1]} : vector<16x32xf32> to vector<8x16xf32>
    %30 = vector.extract_strided_slice %7 {offsets = [8, 0], sizes = [8, 16], strides = [1, 1]} : vector<16x32xf32> to vector<8x16xf32>
    %31 = vector.extract_strided_slice %7 {offsets = [8, 16], sizes = [8, 16], strides = [1, 1]} : vector<16x32xf32> to vector<8x16xf32>
    %32 = vector.shape_cast %28 : vector<8x16xf32> to vector<1x8x16xf32>
    %33 = vector.shape_cast %29 : vector<8x16xf32> to vector<1x8x16xf32>
    %34 = vector.shape_cast %30 : vector<8x16xf32> to vector<1x8x16xf32>
    %35 = vector.shape_cast %31 : vector<8x16xf32> to vector<1x8x16xf32>
    %36 = tpu.concatenate %32, %33, %34, %35 in 0 : vector<1x8x16xf32>, vector<1x8x16xf32>, vector<1x8x16xf32>, vector<1x8x16xf32> -> vector<4x8x16xf32>
    %37 = arith.truncf %36 : vector<4x8x16xf32> to vector<4x8x16xbf16>
    "tpu.trace_start"() <{level = 10 : i32, message = "ztd,zsd->zts"}> : () -> ()
    %cst_4 = arith.constant dense<0.000000e+00> : vector<4x8x8xf32>
    %38 = tpu.matmul %17, %27, %cst_4 {dimension_numbers = #tpu.dot_dimension_numbers<[2], [2], [1], [1], [0, 0, 0, 1, 1, 1], [0], [0]>} : vector<4x8x16xbf16>, vector<4x8x16xbf16>, vector<4x8x8xf32> -> vector<4x8x8xf32>
    "tpu.trace_stop"() : () -> ()
    %39 = tpu.iota {dimensions = array<i32: 0>} : vector<8x8xi32>
    %40 = tpu.iota {dimensions = array<i32: 1>} : vector<8x8xi32>
    %41 = arith.cmpi sgt, %40, %39 : vector<8x8xi32>
    %42 = vector.shape_cast %41 : vector<8x8xi1> to vector<1x8x8xi1>
    %cst_5 = arith.constant -1.000000e+30 : f32
    %43 = vector.shape_cast %42 : vector<1x8x8xi1> to vector<1x8x8xi1>
    %44 = vector.broadcast %43 : vector<1x8x8xi1> to vector<4x8x8xi1>
    %45 = vector.broadcast %cst_5 : f32 to vector<4x8x8xf32>
    %46 = arith.select %44, %45, %38 : vector<4x8x8xi1>, vector<4x8x8xf32>
    %cst_6 = arith.constant dense<0xFF800000> : vector<4x8xf32>
    %47 = vector.multi_reduction <maximumf>, %46, %cst_6 [2] : vector<4x8x8xf32> to vector<4x8xf32>
    %48 = vector.shape_cast %47 : vector<4x8xf32> to vector<4x8x1xf32>
    %49 = vector.broadcast %48 : vector<4x8x1xf32> to vector<4x8x8xf32>
    %50 = arith.subf %46, %49 : vector<4x8x8xf32>
    %51 = math.exp %50 : vector<4x8x8xf32>
    %cst_7 = arith.constant dense<0.000000e+00> : vector<4x8xf32>
    %52 = vector.multi_reduction <add>, %51, %cst_7 [2] : vector<4x8x8xf32> to vector<4x8xf32>
    %53 = vector.shape_cast %52 : vector<4x8xf32> to vector<4x8x1xf32>
    %54 = tpu.reciprocal %53 {approx = true} : vector<4x8x1xf32> -> vector<4x8x1xf32>
    %55 = vector.broadcast %54 : vector<4x8x1xf32> to vector<4x8x8xf32>
    %56 = arith.mulf %51, %55 : vector<4x8x8xf32>
    %57 = arith.truncf %56 : vector<4x8x8xf32> to vector<4x8x8xbf16>
    "tpu.trace_start"() <{level = 10 : i32, message = "zts,zsd->ztd"}> : () -> ()
    %cst_8 = arith.constant dense<0.000000e+00> : vector<4x8x16xf32>
    %58 = tpu.matmul %57, %37, %cst_8 {dimension_numbers = #tpu.dot_dimension_numbers<[2], [1], [1], [2], [0, 0, 0, 1, 1, 2], [0], [0]>} : vector<4x8x8xbf16>, vector<4x8x16xbf16>, vector<4x8x16xf32> -> vector<4x8x16xf32>
    "tpu.trace_stop"() : () -> ()
    %59 = vector.extract_strided_slice %58 {offsets = [0, 0, 0], sizes = [1, 8, 16], strides = [1, 1, 1]} : vector<4x8x16xf32> to vector<1x8x16xf32>
    %60 = vector.shape_cast %59 : vector<1x8x16xf32> to vector<8x16xf32>
    %61 = vector.extract_strided_slice %58 {offsets = [1, 0, 0], sizes = [1, 8, 16], strides = [1, 1, 1]} : vector<4x8x16xf32> to vector<1x8x16xf32>
    %62 = vector.shape_cast %61 : vector<1x8x16xf32> to vector<8x16xf32>
    %63 = tpu.concatenate %60, %62 in 1 : vector<8x16xf32>, vector<8x16xf32> -> vector<8x32xf32>
    %64 = vector.extract_strided_slice %58 {offsets = [2, 0, 0], sizes = [1, 8, 16], strides = [1, 1, 1]} : vector<4x8x16xf32> to vector<1x8x16xf32>
    %65 = vector.shape_cast %64 : vector<1x8x16xf32> to vector<8x16xf32>
    %66 = vector.extract_strided_slice %58 {offsets = [3, 0, 0], sizes = [1, 8, 16], strides = [1, 1, 1]} : vector<4x8x16xf32> to vector<1x8x16xf32>
    %67 = vector.shape_cast %66 : vector<1x8x16xf32> to vector<8x16xf32>
    %68 = tpu.concatenate %65, %67 in 1 : vector<8x16xf32>, vector<8x16xf32> -> vector<8x32xf32>
    %69 = tpu.concatenate %63, %68 in 0 : vector<8x32xf32>, vector<8x32xf32> -> vector<16x32xf32>
    %c0_9 = arith.constant 0 : index
    %c0_10 = arith.constant 0 : index
    %70 = vector.load %arg3[%c0_9, %c0_10] : memref<16x32xf32, #tpu.memory_space<vmem>>, vector<16x32xf32>
    tpu.vector_store %arg3[%c0_9, %c0_10], %69 {strides = array<i32>} : memref<16x32xf32, #tpu.memory_space<vmem>>, vector<16x32xf32>,
    return
  }
  func.func @transform_0(%arg0: i32) -> (i32, i32) {
    %c0_i32 = arith.constant 0 : i32
    %c0_i32_0 = arith.constant 0 : i32
    return %arg0, %c0_i32 : i32, i32
  }
  func.func @transform_1(%arg0: i32) -> (i32, i32) {
    %c0_i32 = arith.constant 0 : i32
    %c0_i32_0 = arith.constant 0 : i32
    %c0_i32_1 = arith.constant 0 : i32
    return %c0_i32, %c0_i32_0 : i32, i32
  }
  func.func @transform_2(%arg0: i32) -> (i32, i32) {
    %c0_i32 = arith.constant 0 : i32
    %c0_i32_0 = arith.constant 0 : i32
    return %arg0, %c0_i32 : i32, i32
  }
}

</mosaic_0001>

<bundles_post_ra>
// kernel: tpu_custom_call.1
= control target key start
LH: loop header
LB: loop body
LE: loop exit
PB: predicated region body
PF: predicated region fallthrough
CT: control target
= control target key end

     0   :  { %7 = vsyncpa [#allocation3], 0  ;;  %s953_s0 = inlined_call_operand.hbm [shape: bf16[16,32], index: 0, kind: input, shape index: {}]   ;;  %s954_s1 = inlined_call_operand.hbm [shape: bf16[32,96], index: 1, kind: input, shape index: {}]   ;;  %s955_s2 = inlined_call_operand.hbm [shape: f32[16,32], index: 2, kind: output, shape index: {}]  }
   0x1   :  { %8 = vsyncpa [#allocation6], 0 }
   0x2   :  { %9 = vsyncpa [#allocation4], 0  ;;  %s805_s9 = smov [#allocation2]   ;;  %s733_s13 = scalar_lea.hbm %s953_s0, 128 }
   0x3   :  { %s15_s10 = sshll.u32 %s805_s9, 4  ;;  %p734_p0 = scmp.ne.s32.totalorder %s953_s0, %s733_s13  ;;  %s16_s10 = int_to_ptr.vmem [resolvable:$true] %s15_s10 }
   0x4   :  { %p737_p1 = scmp.lt.u32.totalorder %s733_s13, %s953_s0 }
   0x6   :  { %p739_p2 = pnand %p737_p1, %p734_p0 }
   0x8   :  { %742 = shalt.err (!%p739_p2)
}
   0x9   :  { %s743_s18 = scalar_lea.vmem %s16_s10, 128  ;;  %p748_p4 = scmp.lt.s32.totalorder %s16_s10, %s16_s10 }
   0xa   :  { %p744_p3 = scmp.ne.s32.totalorder %s16_s10, %s743_s18  ;;  %p749_p5 = scmp.lt.s32.totalorder %s743_s18, %s743_s18 }
   0xc   :  { %p750_p6 = por %p749_p5, %p748_p4 }
   0xe   :  { %p751_p7 = pnand %p750_p6, %p744_p3 }
  0x10   :  { %754 = shalt.err (!%p751_p7)
}
  0x11   :  { %s806_s19 = smov 64   ;;  %s807_s20 = smov 4  }
  0x12   :  { %21 = dma.hbm_to_vmem [thread:$0]  %s953_s0, 128, %s16_s10, [#allocation3], %s806_s19, %s806_s19, %s807_s20  }
  0x13   :  { %s808_s23 = smov [#allocation5]   ;;  %s755_s27 = scalar_lea.hbm %s954_s1, 256 }
  0x14   :  { %s27_s24 = sshll.u32 %s808_s23, 4  ;;  %p756_p8 = scmp.ne.s32.totalorder %s954_s1, %s755_s27  ;;  %s28_s24 = int_to_ptr.vmem [resolvable:$true] %s27_s24 }
  0x15   :  { %p759_p9 = scmp.lt.u32.totalorder %s755_s27, %s954_s1 }
  0x17   :  { %p761_p10 = pnand %p759_p9, %p756_p8 }
  0x19   :  { %764 = shalt.err (!%p761_p10)
}
  0x1a   :  { %s765_s4 = scalar_lea.vmem %s28_s24, 256  ;;  %p770_p12 = scmp.lt.s32.totalorder %s28_s24, %s28_s24 }
  0x1b   :  { %p766_p11 = scmp.ne.s32.totalorder %s28_s24, %s765_s4  ;;  %p771_p13 = scmp.lt.s32.totalorder %s765_s4, %s765_s4 }
  0x1d   :  { %p772_p0 = por %p771_p13, %p770_p12 }
  0x1f   :  { %p773_p1 = pnand %p772_p0, %p766_p11 }
  0x21   :  { %776 = shalt.err (!%p773_p1)
}
  0x22   :  { %33 = dma.hbm_to_vmem [thread:$0]  %s954_s1, 256, %s28_s24, [#allocation6], %s806_s19, %s806_s19, %s807_s20  }
  0x23   :  { %799 = dma.done.wait [#allocation3], 128  }
  0x24   :  { %800 = vsyncadd [#allocation3], 4294967168 }
  0x25   :  { %801 = dma.done.wait [#allocation6], 256  }
  0x26   :  { %802 = vsyncadd [#allocation6], 4294967040  ;;  %v809_v0 = vmov 0.0   ;;  %vm810_vm0 = vmmov 0   ;;  %v714_v1 = vld [vmem:[#allocation5] sm:$0xff]   ;;  %v715_v2 = vld [vmem:[#allocation5 + $0x8] sm:$0xff]   ;;  %v332_v30 = vlaneseq }
  0x27   :  { %646 = vmatprep.subr.bf16.mxu0 %v809_v0  ;;  %650 = vmatprep.mubr.msk.bf16.mxu0 %vm810_vm0, %v809_v0  ;;  %v716_v3 = vld [vmem:[#allocation2] sm:$0xff]   ;;  %vm64_vm1 = vcmask 261120   ;;  %s811_s1 = smov 112   ;;  %s812_s6 = smov 96   ;;  %vm138_vm2 = vcmask 130048   ;;  %vm343_vm4 = vcmask 64512  }
  0x28   :  { %654 = vmatprep.subr.bf16.mxu1 %v809_v0  ;;  %656 = vmatprep.mubr.msk.bf16.mxu1 %vm810_vm0, %v809_v0  ;;  %v333_v31 = vshrl.u32 %v332_v30, 7  ;;  %v335_v32 = vand.u32 127, %v332_v30  ;;  %vm397_vm5 = vcmask 1043456   ;;  %s813_s7 = smov 16   ;;  %s814_s8 = smov [#allocation7]  }
  0x29   :  { %647 = vmatpush3.bf16.msra.mxu0 %v714_v1  ;;  %s602_s9 = sshll.u32 %s814_s8, 4  ;;  %s603_s9 = int_to_ptr.vmem [resolvable:$true] %s602_s9 }
  0x2a   :  { %648 = vmatprep.subr.bf16.mxu0 %v809_v0  ;;  %vm336_vm3 = vcmp.gt.s32.totalorder %v335_v32, %v333_v31  ;;  %s777_s10 = scalar_lea.vmem %s603_s9, 256  ;;  %p782_p3 = scmp.lt.s32.totalorder %s603_s9, %s603_s9 }
  0x2b   :  { %p778_p2 = scmp.ne.s32.totalorder %s603_s9, %s777_s10  ;;  %p783_p4 = scmp.lt.s32.totalorder %s777_s10, %s777_s10 }
  0x2d   :  { %649 = vmatpush3.bf16.msra.mxu0 %v715_v2  ;;  %p784_p5 = por %p783_p4, %p782_p3 }
  0x2e   :  { %660 = vmatprep.subr.bf16.mxu0 %v809_v0 }
  0x2f   :  { %p785_p6 = pnand %p784_p5, %p778_p2 }
  0x30   :  { %651 = vmatmul.mubr.msk.bf16.vlgmr.msra.gmra.mrb[0].mxu0 %vm64_vm1, %v716_v3 }
  0x31   :  { %662 = vmatprep.mubr.msk.bf16.mxu0 %vm810_vm0, %v809_v0 }
 0x103   :  { %v102_v4 = vpop.f32.mrb[0].mxu0 }
 0x104   :  { %124 = vrot.lane.b32.xlu0 %v102_v4, %s811_s1  ;;  %v652_v5 = vpop.f32.mrb[1].mxu0  ;;  %v109_v11 = vmul.f32 0.25, %v102_v4  ;;  %v877_v13 = vpack.c.bf16 %v102_v4, %v102_v4 }
 0x105   :  { %v105_v6 = vpop.f32.mrb[2].mxu0 }
 0x106   :  { %v653_v7 = vpop.f32.mrb[3].mxu0  ;;  %v110_v14 = vmul.f32 0.25, %v105_v6  ;;  %v880_v15 = vpack.c.bf16 %v105_v6, %v105_v6  ;;  %v119_v26 = vpack.c.bf16 %v109_v11, %v109_v11 }
 0x108   :  { %128 = vrot.lane.b32.xlu0 %v105_v6, %s811_s1  ;;  %v121_v29 = vpack.c.bf16 %v110_v14, %v110_v14 }
 0x176   :  { %v125_v8 = vpop.permute.xlu0 %124 }
 0x177   :  { %v871_v9 = vpack.c.bf16 %v125_v8, %v125_v8 }
 0x179   :  { %186 = vrot.lane.b32.xlu1 %v871_v9, %s812_s6 }
 0x17a   :  { %v129_v10 = vpop.permute.xlu0 %128 }
 0x17b   :  { %v874_v12 = vpack.c.bf16 %v129_v10, %v129_v10 }
 0x17d   :  { %112 = vrot.lane.b32.xlu1 %v109_v11, %s811_s1  ;;  %284 = vrot.lane.b32.xlu0 %v874_v12, %s812_s6 }
 0x181   :  { %136 = vrot.lane.b32.xlu0 %v877_v13, %s812_s6  ;;  %116 = vrot.lane.b32.xlu1 %v110_v14, %s811_s1 }
 0x185   :  { %235 = vrot.lane.b32.xlu1 %v880_v15, %s812_s6 }
 0x1eb   :  { %v187_v16 = vpop.permute.xlu1 %186 }
 0x1ec   :  { %v192_v17 = vsel %vm138_vm2, %v187_v16, 0 }
 0x1ed   :  { %661 = vmatpush3.bf16.xpose.msra.mxu0 %v192_v17 }
 0x1ee   :  { %672 = vmatprep.subr.bf16.mxu0 %v809_v0 }
 0x1ef   :  { %v113_v18 = vpop.permute.xlu1 %112  ;;  %v285_v19 = vpop.permute.xlu0 %284 }
 0x1f0   :  { %v120_v20 = vpack.c.bf16 %v113_v18, %v113_v18  ;;  %v290_v23 = vsel %vm138_vm2, %v285_v19, 0 }
 0x1f3   :  { %v137_v21 = vpop.permute.xlu0 %136  ;;  %v117_v22 = vpop.permute.xlu1 %116 }
 0x1f4   :  { %663 = vmatmul.mubr.msk.bf16.vlgmr.msra.gmra.mrb[4].mxu0 %vm138_vm2, %v120_v20  ;;  %v143_v24 = vsel %vm138_vm2, %v137_v21, 0  ;;  %v122_v27 = vpack.c.bf16 %v117_v22, %v117_v22 }
 0x1f5   :  { %655 = vmatpush3.bf16.xpose.msra.mxu1 %v143_v24  ;;  %673 = vmatpush3.bf16.xpose.msra.mxu0 %v290_v23 }
 0x1f6   :  { %674 = vmatprep.mubr.msk.bf16.mxu0 %vm810_vm0, %v809_v0  ;;  %666 = vmatprep.subr.bf16.mxu1 %v809_v0 }
 0x1f7   :  { %684 = vmatprep.subr.bf16.mxu0 %v809_v0  ;;  %v236_v25 = vpop.permute.xlu1 %235 }
 0x1f8   :  { %v241_v28 = vsel %vm138_vm2, %v236_v25, 0 }
 0x1fc   :  { %657 = vmatmul.mubr.msk.bf16.vlgmr.msra.gmra.mrb[0].mxu1 %vm138_vm2, %v119_v26  ;;  %675 = vmatmul.mubr.msk.bf16.vlgmr.msra.gmra.mrb[8].mxu0 %vm138_vm2, %v122_v27 }
 0x1fd   :  { %667 = vmatpush3.bf16.xpose.msra.mxu1 %v241_v28  ;;  %668 = vmatprep.mubr.msk.bf16.mxu1 %vm810_vm0, %v809_v0 }
 0x1fe   :  { %686 = vmatprep.mubr.msk.bf16.mxu0 %vm810_vm0, %v809_v0  ;;  %678 = vmatprep.subr.bf16.mxu1 %v809_v0 }
 0x204   :  { %669 = vmatmul.mubr.msk.bf16.vlgmr.msra.gmra.mrb[4].mxu1 %vm138_vm2, %v121_v29 }
 0x205   :  { %680 = vmatprep.mubr.msk.bf16.mxu1 %vm810_vm0, %v809_v0 }
 0x2c7   :  { %v228_v33 = vpop.f32.mrb[4].mxu0 }
 0x2c8   :  { %v340_v34 = vsel %vm336_vm3, -1e+30, %v228_v33  ;;  %v664_v35 = vpop.f32.mrb[5].mxu0 }
 0x2c9   :  { %v231_v36 = vpop.f32.mrb[6].mxu0  ;;  %v347_v37 = vsel %vm343_vm4, %v340_v34, -inf }
 0x2ca   :  { %348 = vmax.xlane.f32.xlu0 %v347_v37  ;;  %v665_v38 = vpop.f32.mrb[7].mxu0 }
 0x2cf   :  { %v179_v39 = vpop.f32.mrb[0].mxu1  ;;  %v326_v40 = vpop.f32.mrb[8].mxu0 }
 0x2d0   :  { %v339_v41 = vsel %vm336_vm3, -1e+30, %v179_v39  ;;  %v342_v42 = vsel %vm336_vm3, -1e+30, %v326_v40  ;;  %v658_v43 = vpop.f32.mrb[1].mxu1  ;;  %v676_v44 = vpop.f32.mrb[9].mxu0 }
 0x2d1   :  { %v182_v45 = vpop.f32.mrb[2].mxu1  ;;  %v329_v46 = vpop.f32.mrb[10].mxu0  ;;  %v344_v47 = vsel %vm343_vm4, %v339_v41, -inf  ;;  %v353_v48 = vsel %vm343_vm4, %v342_v42, -inf }
 0x2d2   :  { %v659_v49 = vpop.f32.mrb[3].mxu1  ;;  %345 = vmax.xlane.f32.xlu0 %v344_v47  ;;  %354 = vmax.xlane.f32.xlu1 %v353_v48  ;;  %v677_v50 = vpop.f32.mrb[11].mxu0 }
 0x2d7   :  { %v277_v51 = vpop.f32.mrb[4].mxu1 }
 0x2d8   :  { %v341_v52 = vsel %vm336_vm3, -1e+30, %v277_v51  ;;  %v670_v53 = vpop.f32.mrb[5].mxu1 }
 0x2d9   :  { %v280_v54 = vpop.f32.mrb[6].mxu1  ;;  %v350_v55 = vsel %vm343_vm4, %v341_v52, -inf }
 0x2da   :  { %v671_v56 = vpop.f32.mrb[7].mxu1  ;;  %351 = vmax.xlane.f32.xlu0 %v350_v55 }
 0x357   :  { %v349_v57 = vpop.xlane.xlu0 %348 }
 0x358   :  { %v357_v58 = vsub.f32 %v340_v34, %v349_v57 }
 0x35a   :  { %v362_v59 = vmul.f32 1.442695, %v357_v58 }
 0x35c   :  { %717 = vpow2.f32 %v362_v59 }
 0x35f   :  { %v355_v60 = vpop.xlane.xlu1 %354  ;;  %v346_v4 = vpop.xlane.xlu0 %345 }
 0x360   :  { %v359_v61 = vsub.f32 %v342_v42, %v355_v60  ;;  %v356_v5 = vsub.f32 %v339_v41, %v346_v4 }
 0x362   :  { %v366_v62 = vmul.f32 1.442695, %v359_v61  ;;  %v360_v6 = vmul.f32 1.442695, %v356_v5 }
 0x364   :  { %719 = vpow2.f32 %v366_v62 }
 0x365   :  { %721 = vpow2.f32 %v360_v6 }
 0x366   :  { %v718_v63 = vpop.eup %717 }
 0x367   :  { %v371_v1 = vsel %vm343_vm4, %v718_v63, 0.0  ;;  %v352_v7 = vpop.xlane.xlu0 %351 }
 0x368   :  { %372 = vadd.xlane.f32.xlu1 %v371_v1  ;;  %v358_v8 = vsub.f32 %v341_v52, %v352_v7 }
 0x36a   :  { %v364_v10 = vmul.f32 1.442695, %v358_v8 }
 0x36c   :  { %723 = vpow2.f32 %v364_v10 }
 0x36e   :  { %v720_v2 = vpop.eup %719 }
 0x36f   :  { %v377_v3 = vsel %vm343_vm4, %v720_v2, 0.0  ;;  %v722_v11 = vpop.eup %721 }
 0x370   :  { %378 = vadd.xlane.f32.xlu0 %v377_v3  ;;  %v368_v14 = vsel %vm343_vm4, %v722_v11, 0.0 }
 0x376   :  { %v724_v16 = vpop.eup %723 }
 0x377   :  { %v374_v17 = vsel %vm343_vm4, %v724_v16, 0.0 }
 0x379   :  { %441 = vrot.lane.b32.xlu1 %v871_v9, %s806_s19 }
 0x386   :  { %537 = vrot.lane.b32.xlu0 %v874_v12, %s806_s19 }
 0x39d   :  { %369 = vadd.xlane.f32.xlu1 %v368_v14 }
 0x3a5   :  { %375 = vadd.xlane.f32.xlu0 %v374_v17 }
 0x3ae   :  { %392 = vrot.lane.b32.xlu1 %v877_v13, %s806_s19 }
 0x3bb   :  { %489 = vrot.lane.b32.xlu0 %v880_v15, %s806_s19 }
 0x3f5   :  { %v373_v9 = vpop.xlane.xlu1 %372 }
 0x3f6   :  { %725 = vrcp.f32 %v373_v9 }
 0x3f9   :  { %v442_v12 = vpop.permute.xlu1 %441 }
 0x3fa   :  { %v447_v18 = vsel %vm397_vm5, %v442_v12, 0 }
 0x3fb   :  { %685 = vmatpush3.bf16.msra.mxu0 %v447_v18 }
 0x3fc   :  { %696 = vmatprep.subr.bf16.mxu0 %v809_v0 }
 0x3fd   :  { %v379_v19 = vpop.xlane.xlu0 %378 }
 0x3fe   :  { %727 = vrcp.f32 %v379_v19 }
 0x400   :  { %v726_v20 = vpop.eup %725 }
 0x401   :  { %v385_v21 = vmul.f32 %v726_v20, %v718_v63  ;;  %v538_v22 = vpop.permute.xlu0 %537 }
 0x402   :  { %v543_v13 = vsel %vm397_vm5, %v538_v22, 0 }
 0x403   :  { %v389_v23 = vpack.c.bf16 %v385_v21, %v385_v21 }
 0x405   :  { %687 = vmatmul.mubr.msk.bf16.vlgmr.msra.gmra.mrb[12].mxu0 %vm343_vm4, %v389_v23 }
 0x406   :  { %697 = vmatpush3.bf16.msra.mxu0 %v543_v13  ;;  %698 = vmatprep.mubr.msk.bf16.mxu0 %vm810_vm0, %v809_v0 }
 0x408   :  { %v728_v15 = vpop.eup %727 }
 0x409   :  { %v387_v24 = vmul.f32 %v728_v15, %v720_v2 }
 0x40b   :  { %v391_v25 = vpack.c.bf16 %v387_v24, %v387_v24 }
 0x40d   :  { %699 = vmatmul.mubr.msk.bf16.vlgmr.msra.gmra.mrb[16].mxu0 %vm343_vm4, %v391_v25 }
 0x42a   :  { %v370_v26 = vpop.xlane.xlu1 %369 }
 0x42b   :  { %729 = vrcp.f32 %v370_v26 }
 0x42e   :  { %v393_v27 = vpop.permute.xlu1 %392 }
 0x42f   :  { %v399_v28 = vsel %vm397_vm5, %v393_v27, 0 }
 0x430   :  { %679 = vmatpush3.bf16.msra.mxu1 %v399_v28 }
 0x431   :  { %690 = vmatprep.subr.bf16.mxu1 %v809_v0 }
 0x432   :  { %v376_v29 = vpop.xlane.xlu0 %375 }
 0x433   :  { %731 = vrcp.f32 %v376_v29 }
 0x435   :  { %v730_v30 = vpop.eup %729 }
 0x436   :  { %v384_v31 = vmul.f32 %v730_v30, %v722_v11  ;;  %v490_v32 = vpop.permute.xlu0 %489 }
 0x437   :  { %v495_v34 = vsel %vm397_vm5, %v490_v32, 0 }
 0x438   :  { %v388_v33 = vpack.c.bf16 %v384_v31, %v384_v31 }
 0x43a   :  { %681 = vmatmul.mubr.msk.bf16.vlgmr.msra.gmra.mrb[8].mxu1 %vm343_vm4, %v388_v33 }
 0x43b   :  { %691 = vmatpush3.bf16.msra.mxu1 %v495_v34  ;;  %692 = vmatprep.mubr.msk.bf16.mxu1 %vm810_vm0, %v809_v0 }
 0x43d   :  { %v732_v35 = vpop.eup %731 }
 0x43e   :  { %v386_v36 = vmul.f32 %v732_v35, %v724_v16 }
 0x440   :  { %v390_v37 = vpack.c.bf16 %v386_v36, %v386_v36 }
 0x442   :  { %693 = vmatmul.mubr.msk.bf16.vlgmr.msra.gmra.mrb[12].mxu1 %vm343_vm4, %v390_v37 }
 0x4d8   :  { %v483_v38 = vpop.f32.mrb[12].mxu0 }
 0x4d9   :  { %586 = vrot.lane.b32.xlu1 %v483_v38, %s813_s7  ;;  %v688_v39 = vpop.f32.mrb[13].mxu0 }
 0x4da   :  { %v486_v40 = vpop.f32.mrb[14].mxu0 }
 0x4db   :  { %v689_v41 = vpop.f32.mrb[15].mxu0 }
 0x4e0   :  { %v579_v42 = vpop.f32.mrb[16].mxu0 }
 0x4e1   :  { %591 = vrot.lane.b32.xlu1 %v579_v42, %s813_s7  ;;  %v700_v43 = vpop.f32.mrb[17].mxu0 }
 0x4e2   :  { %v582_v44 = vpop.f32.mrb[18].mxu0 }
 0x4e3   :  { %v701_v45 = vpop.f32.mrb[19].mxu0 }
 0x50d   :  { %v435_v46 = vpop.f32.mrb[8].mxu1 }
 0x50e   :  { %v682_v47 = vpop.f32.mrb[9].mxu1 }
 0x50f   :  { %v438_v48 = vpop.f32.mrb[10].mxu1 }
 0x510   :  { %v683_v0 = vpop.f32.mrb[11].mxu1 }
 0x515   :  { %v531_v49 = vpop.f32.mrb[12].mxu1 }
 0x516   :  { %v694_v50 = vpop.f32.mrb[13].mxu1 }
 0x517   :  { %v534_v51 = vpop.f32.mrb[14].mxu1 }
 0x518   :  { %v695_v52 = vpop.f32.mrb[15].mxu1 }
 0x54b   :  { %v587_v53 = vpop.permute.xlu1 %586 }
 0x54c   :  { %v589_v54 = vsel %vm138_vm2, %v435_v46, %v587_v53 }
 0x54d   :  { %595 = vst.msk [vmem:[#allocation7] sm:$0xff] %vm64_vm1, %v589_v54 }
 0x553   :  { %v592_v55 = vpop.permute.xlu1 %591 }
 0x554   :  { %v594_v56 = vsel %vm138_vm2, %v531_v49, %v592_v55 }
 0x555   :  { %596 = vst.msk [vmem:[#allocation7 + $0x8] sm:$0xff] %vm64_vm1, %v594_v56 }
 0x556   :  { %788 = shalt.err (!%p785_p6)
}
 0x557   :  { %s789_s13 = scalar_lea.hbm %s955_s2, 256 }
 0x558   :  { %p790_p7 = scmp.ne.s32.totalorder %s955_s2, %s789_s13  ;;  %p793_p8 = scmp.lt.u32.totalorder %s789_s13, %s955_s2 }
 0x55a   :  { %p795_p9 = pnand %p793_p8, %p790_p7 }
 0x55c   :  { %798 = shalt.err (!%p795_p9)
}
 0x55d   :  { %s815_s18 = smov 128   ;;  %s816_s19 = smov 8  }
 0x55e   :  { %608 = dma.vmem_to_hbm [thread:$0]  %s603_s9, 256, %s955_s2, [#allocation4], %s815_s18, %s815_s18, %s816_s19  }
 0x55f   :  { %803 = dma.done.wait [#allocation4], 256  }
 0x560   :  { %804 = vsyncadd [#allocation4], 4294967040 }
 0x561   :  { %612 = vsyncpa [#allocation3], 1 }
 0x562   :  { %613 = vsyncpa [#allocation6], 1 }
 0x563   :  { %614 = vsyncpa [#allocation4], 1 }

</bundles_post_ra>
